<compile_context>
chip_gen: v6e
topology: v6e:2x2x1
jax: 0.10.0
libtpu: 0.0.40
codegen_flags: <defaults>
</compile_context>

<pallas_src>
import jax
import jax.numpy as jnp
from jax.experimental import pallas as pl
from jax.experimental.pallas import tpu as pltpu


LANES = 128          # TPU lane width (last dim)
SUBLANES = 8         # f32 sublanes per vreg
TR_MAX = 4096        # rows per tile -> 4096*128*4B = 2 MiB per f32 operand tile
TARGET_STEPS = 2     # aim for >=2 grid steps so v7x megacore can split the grid


def _round_up(x: int, m: int) -> int:
    return ((x + m - 1) // m) * m


def _scale_shift_kernel(scale_ref, shift_ref, energy_ref, n_atoms_ref, out_ref):
    # scale_ref / shift_ref: (1, 1) scalars in SMEM
    # energy_ref / out_ref:  (TR, 128) f32 tiles in VMEM
    # n_atoms_ref:           (TR, 128) int16 (or f32) tile in VMEM
    scale = scale_ref[0, 0]
    shift = shift_ref[0, 0]
    n_atoms_f = n_atoms_ref[...].astype(jnp.float32)
    out_ref[...] = energy_ref[...] * scale + shift * n_atoms_f


def global_scale_shift(energy: jax.Array, n_atoms: jax.Array,
                       mean: float = 0.0, std: float = 1.0) -> jax.Array:
    """energy: (B,) float; n_atoms: (B,) int/float. Returns (B,) float32."""
    B = energy.shape[0]
    if B == 0:  # empty batch guard (grid of size 0 is invalid)
        return jnp.zeros((0,), jnp.float32)

    B_pad = _round_up(B, LANES)
    R = B_pad // LANES
    pad = B_pad - B

    # Narrow the n_atoms stream: int16 (2 B/elem) when it is an integer count,
    # f32 otherwise (preserves exactness for float inputs).
    energy_f = energy.astype(jnp.float32)
    if jnp.issubdtype(n_atoms.dtype, jnp.integer):
        n_small = n_atoms.astype(jnp.int16)
    else:
        n_small = n_atoms.astype(jnp.float32)

    if pad:
        energy_f = jnp.pad(energy_f, (0, pad))
        n_small = jnp.pad(n_small, (0, pad))
    energy2d = energy_f.reshape(R, LANES)      # bitcast when pad == 0
    n_atoms2d = n_small.reshape(R, LANES)

    scale = jnp.asarray(std, dtype=jnp.float32).reshape(1, 1)
    shift = jnp.asarray(mean, dtype=jnp.float32).reshape(1, 1)

    # Tile selection: full-extent block for tiny batches, otherwise a
    # sublane-aligned tile sized for >= TARGET_STEPS grid steps, capped at
    # TR_MAX (2 MiB/operand) so it fits scoped VMEM on all generations.
    if R <= SUBLANES:
        TR = R                                   # block == full array dims
    else:
        TR = min(TR_MAX, _round_up(pl.cdiv(R, TARGET_STEPS), SUBLANES))
    grid = (pl.cdiv(R, TR),)                     # last block may be partial

    bytes_per_elem = 4 + jnp.dtype(n_atoms2d.dtype).itemsize + 4
    cost = pl.CostEstimate(flops=3 * B_pad,
                           transcendentals=0,
                           bytes_accessed=bytes_per_elem * B_pad)

    out = pl.pallas_call(
        _scale_shift_kernel,
        out_shape=jax.ShapeDtypeStruct((R, LANES), jnp.float32),
        grid=grid,
        in_specs=[
            pl.BlockSpec(memory_space=pltpu.SMEM),               # scale (1,1)
            pl.BlockSpec(memory_space=pltpu.SMEM),               # shift (1,1)
            pl.BlockSpec((TR, LANES), lambda i: (i, 0)),          # energy tile
            pl.BlockSpec((TR, LANES), lambda i: (i, 0)),          # n_atoms tile
        ],
        out_specs=pl.BlockSpec((TR, LANES), lambda i: (i, 0)),
        # Reuse the padded-energy intermediate as the output buffer only when
        # it actually is a fresh intermediate (pad happened); otherwise the
        # input shares the caller's buffer and aliasing would force a copy.
        input_output_aliases={2: 0} if pad else {},
        compiler_params=pltpu.CompilerParams(
            dimension_semantics=("parallel",),
        ),
        cost_estimate=cost,
    )(scale, shift, energy2d, n_atoms2d)

    out = out.reshape(B_pad)
    return out[:B] if pad else out


if __name__ == "__main__":
    key = jax.random.PRNGKey(0)
    k_e, k_n = jax.random.split(key)

    # Small batch (module-typical): exercises the single-block fast path.
    B = 8
    energy = jax.random.normal(k_e, (B,), dtype=jnp.float32) * 5.0
    n_atoms = jax.random.randint(k_n, (B,), minval=1, maxval=30, dtype=jnp.int32)

    mean = 1.5   # shift
    std = 2.25   # scale

    out = global_scale_shift(energy, n_atoms, mean=mean, std=std)
    out = jax.block_until_ready(out)

    ref = energy * std + mean * n_atoms.astype(jnp.float32)
    assert out.shape == (B,)
    assert jnp.allclose(out, ref, rtol=1e-6, atol=1e-6), (out, ref)

    # Larger batch: exercises the tiled grid + partial-final-block path.
    k_e2, k_n2 = jax.random.split(k_n)
    B2 = 1300
    energy2 = jax.random.normal(k_e2, (B2,), dtype=jnp.float32)
    n_atoms2 = jax.random.randint(k_n2, (B2,), minval=1, maxval=100,
                                  dtype=jnp.int32)
    out2 = jax.block_until_ready(
        global_scale_shift(energy2, n_atoms2, mean=mean, std=std))
    ref2 = energy2 * std + mean * n_atoms2.astype(jnp.float32)
    assert out2.shape == (B2,)
    assert jnp.allclose(out2, ref2, rtol=1e-6, atol=1e-6)

    print("KERNEL_OK")
</pallas_src>

<mosaic_0001>
module attributes {stable_mosaic.version = 11 : i64} {
  func.func @_scale_shift_kernel(%arg0: i32, %arg1: memref<1x1xf32, #tpu.memory_space<smem>>, %arg2: memref<1x1xf32, #tpu.memory_space<smem>>, %arg3: memref<1x128xf32, #tpu.memory_space<vmem>>, %arg4: memref<1x128xi16, #tpu.memory_space<vmem>>, %arg5: memref<1x128xf32, #tpu.memory_space<vmem>>) attributes {dimension_semantics = [#tpu.dimension_semantics<parallel>], iteration_bounds = array<i64: 1>, scalar_prefetch = 0 : i64, scratch_operands = 0 : i64, tpu.core_type = #tpu.core_type<tc>, window_params = [{transform_indices = @transform_0, window_bounds = array<i64: 1, 1>}, {transform_indices = @transform_1, window_bounds = array<i64: 1, 1>}, {transform_indices = @transform_2, window_bounds = array<i64: 1, 128>}, {transform_indices = @transform_3, window_bounds = array<i64: 1, 128>}, {transform_indices = @transform_4, window_bounds = array<i64: 1, 128>}]} {
    %c0 = arith.constant 0 : index
    %c0_0 = arith.constant 0 : index
    %0 = memref.load %arg1[%c0, %c0_0] : memref<1x1xf32, #tpu.memory_space<smem>>
    %c0_1 = arith.constant 0 : index
    %c0_2 = arith.constant 0 : index
    %1 = memref.load %arg2[%c0_1, %c0_2] : memref<1x1xf32, #tpu.memory_space<smem>>
    %c0_3 = arith.constant 0 : index
    %c0_4 = arith.constant 0 : index
    %2 = vector.load %arg4[%c0_3, %c0_4] : memref<1x128xi16, #tpu.memory_space<vmem>>, vector<1x128xi16>
    %3 = arith.sitofp %2 : vector<1x128xi16> to vector<1x128xf32>
    %c0_5 = arith.constant 0 : index
    %c0_6 = arith.constant 0 : index
    %4 = vector.load %arg3[%c0_5, %c0_6] : memref<1x128xf32, #tpu.memory_space<vmem>>, vector<1x128xf32>
    %5 = vector.broadcast %0 : f32 to vector<1x128xf32>
    %6 = arith.mulf %4, %5 : vector<1x128xf32>
    %7 = vector.broadcast %1 : f32 to vector<1x128xf32>
    %8 = arith.mulf %7, %3 : vector<1x128xf32>
    %9 = arith.addf %6, %8 : vector<1x128xf32>
    %c0_7 = arith.constant 0 : index
    %c0_8 = arith.constant 0 : index
    %10 = vector.load %arg5[%c0_7, %c0_8] : memref<1x128xf32, #tpu.memory_space<vmem>>, vector<1x128xf32>
    tpu.vector_store %arg5[%c0_7, %c0_8], %9 {strides = array<i32>} : memref<1x128xf32, #tpu.memory_space<vmem>>, vector<1x128xf32>,
    return
  }
  func.func @transform_0(%arg0: i32) -> (i32, i32) {
    %c0_i32 = arith.constant 0 : i32
    %c0_i32_0 = arith.constant 0 : i32
    %c0_i32_1 = arith.constant 0 : i32
    return %c0_i32, %c0_i32_0 : i32, i32
  }
  func.func @transform_1(%arg0: i32) -> (i32, i32) {
    %c0_i32 = arith.constant 0 : i32
    %c0_i32_0 = arith.constant 0 : i32
    %c0_i32_1 = arith.constant 0 : i32
    return %c0_i32, %c0_i32_0 : i32, i32
  }
  func.func @transform_2(%arg0: i32) -> (i32, i32) {
    %c0_i32 = arith.constant 0 : i32
    %c0_i32_0 = arith.constant 0 : i32
    return %arg0, %c0_i32 : i32, i32
  }
  func.func @transform_3(%arg0: i32) -> (i32, i32) {
    %c0_i32 = arith.constant 0 : i32
    %c0_i32_0 = arith.constant 0 : i32
    return %arg0, %c0_i32 : i32, i32
  }
  func.func @transform_4(%arg0: i32) -> (i32, i32) {
    %c0_i32 = arith.constant 0 : i32
    %c0_i32_0 = arith.constant 0 : i32
    return %arg0, %c0_i32 : i32, i32
  }
}

</mosaic_0001>

<bundles_post_ra>
// kernel: tpu_custom_call.1
= control target key start
LH: loop header
LB: loop body
LE: loop exit
PB: predicated region body
PF: predicated region fallthrough
CT: control target
= control target key end

     0   :  { %11 = vsyncpa [#allocation5], 0  ;;  %s147_s0 = inlined_call_operand.<no memory space> [shape: f32[1,1], index: 0, kind: input, shape index: {}]   ;;  %s148_s1 = inlined_call_operand.<no memory space> [shape: f32[1,1], index: 1, kind: input, shape index: {}]   ;;  %s149_s2 = inlined_call_operand.hbm [shape: f32[1,128], index: 2, kind: input, shape index: {}, may-alias: {2,4}]   ;;  %s150_s3 = inlined_call_operand.vmem [shape: s16[1,128], index: 3, kind: input, shape index: {}]   ;;  %s151_s4 = inlined_call_operand.hbm [shape: f32[1,128], index: 4, kind: output, shape index: {}, may-alias: {2,4}]  }
   0x1   :  { %12 = vsyncpa [#allocation6], 0  ;;  %s105_s15 = smov [#allocation4]  }
   0x2   :  { %s23_s16 = sshll.u32 %s105_s15, 4  ;;  %s24_s16 = int_to_ptr.vmem [resolvable:$true] %s23_s16 }
   0x3   :  { %s69_s17 = scalar_lea.vmem %s24_s16, 16  ;;  %s73_s18 = scalar_lea.vmem %s24_s16, 32 }
   0x4   :  { %p70_p0 = scmp.ne.s32.totalorder %s24_s16, %s69_s17  ;;  %p74_p1 = scmp.lt.s32.totalorder %s24_s16, %s24_s16 }
   0x5   :  { %p75_p2 = scmp.lt.s32.totalorder %s73_s18, %s69_s17 }
   0x7   :  { %p76_p3 = por %p75_p2, %p74_p1 }
   0x9   :  { %p77_p4 = pnand %p76_p3, %p70_p0 }
   0xb   :  { %80 = shalt.err (!%p77_p4)
}
   0xc   :  { %26 = dma.hbm_to_vmem [thread:$0]  %s149_s2, 16, %s24_s16, [#allocation5]  }
   0xd   :  { %101 = dma.done.wait [#allocation5], 16  }
   0xe   :  { %102 = vsyncadd [#allocation5], 4294967280  ;;  %v34_v0 = vld [vmem:[%s150_s3] sm:$0x1]  ;;  %v38_v2 = vstv %s147_s0  ;;  %v40_v4 = vstv %s148_s1  ;;  %s106_s27 = smov [#allocation7]  }
   0xf   :  { %v37_v1 = vld [vmem:[#allocation4] sm:$0x1]  ;;  %v35_v3 = vunpack.c.l.b16 %v34_v0  ;;  %s50_s2 = sshll.u32 %s106_s27, 4  ;;  %s51_s2 = int_to_ptr.vmem [resolvable:$true] %s50_s2 }
  0x10   :  { %v39_v6 = vmul.f32 %v38_v2, %v37_v1  ;;  %s81_s28 = scalar_lea.vmem %s51_s2, 16  ;;  %s85_s3 = scalar_lea.vmem %s51_s2, 32 }
  0x11   :  { %v36_v5 = vcvt.s32.f32 %v35_v3  ;;  %p82_p5 = scmp.ne.s32.totalorder %s51_s2, %s81_s28  ;;  %p86_p6 = scmp.lt.s32.totalorder %s51_s2, %s51_s2 }
  0x12   :  { %p87_p7 = scmp.lt.s32.totalorder %s85_s3, %s81_s28 }
  0x13   :  { %v41_v7 = vmul.f32 %v40_v4, %v36_v5 }
  0x14   :  { %p88_p8 = por %p87_p7, %p86_p6 }
  0x15   :  { %v42_v8 = vadd.f32 %v41_v7, %v39_v6 }
  0x16   :  { %p89_p9 = pnand %p88_p8, %p82_p5 }
  0x17   :  { %43 = vst [vmem:[#allocation7] sm:$0x1] %v42_v8 }
  0x18   :  { %92 = shalt.err (!%p89_p9)
}
  0x19   :  { %53 = dma.vmem_to_hbm [thread:$0]  %s51_s2, 16, %s151_s4, [#allocation6]  }
  0x1a   :  { %103 = dma.done.wait [#allocation6], 16  }
  0x1b   :  { %104 = vsyncadd [#allocation6], 4294967280 }
  0x1c   :  { %57 = vsyncpa [#allocation5], 1 }
  0x1d   :  { %58 = vsyncpa [#allocation6], 1 }

</bundles_post_ra>
